<compile_context>
chip_gen: v7x
topology: tpu7x:2x2x1
jax: 0.10.0
libtpu: 0.0.40
codegen_flags: <defaults>
</compile_context>

<pallas_src>
import jax
import jax.numpy as jnp
from jax.experimental import pallas as pl
from jax.experimental.pallas import tpu as pltpu

NUM_CLASSES = 8                       # len(info['classes'])
NUM_OUT = NUM_CLASSES + 2             # + Valence + Arousal
OUT_PAD = 128                         # lane-dense padded output width
HIDDEN = 128
VALENCE_IDX = NUM_CLASSES             # info['Valence']
AROUSAL_IDX = NUM_CLASSES + 1         # info['Arousal']
BATCH_TILE = 16                       # bf16 sublane packing: one vreg = (16, 128)
CLASSES = {str(i): name for i, name in enumerate(
    ["neutral", "happy", "sad", "surprise", "fear", "disgust", "anger", "contempt"])}

# TODO(synk): the real backbone is a torch.jit.load'ed black box; the
# architecture is synthesized here (MLP head) since no checkpoint can be loaded.


def _choose_tk(d):
    # Small K tiles for toy D (still gives a multi-step pipelined grid at
    # D=768); 2048-row bf16 tiles for realistic D (224*224*3): double-buffered
    # (Bp,tk)+(tk,128) bf16 blocks stay ~1 MiB, well under the scoped VMEM
    # budget on v5e/v6e/v7x.
    return 256 if d <= 2048 else 2048


def _emotion_mlp_kernel(x_ref, w1_ref, b1_ref, w2_ref, b2_ref, o_ref, acc_ref):
    k = pl.program_id(0)

    @pl.when(k == 0)
    def _():
        acc_ref[...] = jnp.zeros_like(acc_ref)

    # bf16 x bf16 -> f32 accumulate on the MXU; this is the streamed hot loop.
    acc_ref[...] += jnp.dot(x_ref[...], w1_ref[...],
                            preferred_element_type=jnp.float32)

    @pl.when(k == pl.num_programs(0) - 1)
    def _():
        h = jnp.maximum(acc_ref[...] + b1_ref[...], 0.0)
        out = jnp.dot(h.astype(w2_ref.dtype), w2_ref[...],
                      preferred_element_type=jnp.float32) + b2_ref[...]
        o_ref[...] = out.astype(o_ref.dtype)   # single lane-dense (Bp,128) store


def emotion_head(x_flat, w1, b1, w2, b2):
    Bp, Dp = x_flat.shape
    H = w1.shape[1]
    O = w2.shape[1]
    tk = _choose_tk(Dp)
    assert Dp % tk == 0, (Dp, tk)
    n_k = Dp // tk
    return pl.pallas_call(
        _emotion_mlp_kernel,
        out_shape=jax.ShapeDtypeStruct((Bp, O), jnp.float32),
        grid_spec=pltpu.PrefetchScalarGridSpec(
            num_scalar_prefetch=0,
            grid=(n_k,),
            in_specs=[
                pl.BlockSpec((Bp, tk), lambda k: (0, k)),   # x   (bf16, streamed)
                pl.BlockSpec((tk, H), lambda k: (k, 0)),    # w1  (bf16, streamed)
                pl.BlockSpec((1, H), lambda k: (0, 0)),     # b1  (f32, resident)
                pl.BlockSpec((H, O), lambda k: (0, 0)),     # w2  (bf16, resident)
                pl.BlockSpec((1, O), lambda k: (0, 0)),     # b2  (f32, resident)
            ],
            out_specs=pl.BlockSpec((Bp, O), lambda k: (0, 0)),
            scratch_shapes=[pltpu.VMEM((Bp, H), jnp.float32)],
        ),
        compiler_params=pltpu.CompilerParams(
            dimension_semantics=("arbitrary",),     # K is a reduction axis
            vmem_limit_bytes=32 * 1024 * 1024,      # explicit, v7x-safe budget
        ),
    )(x_flat, w1, b1, w2, b2)


def init_params(key, in_dim):
    k1, k2, k3, k4 = jax.random.split(key, 4)
    tk = _choose_tk(in_dim)
    Dp = ((in_dim + tk - 1) // tk) * tk
    w1 = jax.random.normal(k1, (in_dim, HIDDEN), jnp.float32) / jnp.sqrt(
        jnp.float32(in_dim))
    # Zero-pad the reduction dim so tail K blocks contribute exact zeros, and
    # store the streamed weight in bf16 (halves HBM bytes on the dominant
    # tensor; MXU-native input format).
    w1 = jnp.pad(w1, ((0, Dp - in_dim), (0, 0))).astype(jnp.bfloat16)
    b1 = jax.random.normal(k2, (1, HIDDEN), jnp.float32) * 0.01
    w2 = jax.random.normal(k3, (HIDDEN, OUT_PAD), jnp.float32) / jnp.sqrt(
        jnp.float32(HIDDEN))
    b2 = jax.random.normal(k4, (1, OUT_PAD), jnp.float32) * 0.01
    # Zero out padded (unused) output columns so they contribute exact zeros.
    mask = (jnp.arange(OUT_PAD) < NUM_OUT).astype(jnp.float32)
    w2 = (w2 * mask[None, :]).astype(jnp.bfloat16)
    b2 = b2 * mask[None, :]
    return w1, b1, w2, b2


@jax.jit
def _device_forward(image, w1, b1, w2, b2):
    """Device-side half of EmotionDetector.forward (model + slice + argmax)."""
    B = image.shape[0]
    D = image.shape[1] * image.shape[2] * image.shape[3]
    Dp = w1.shape[0]                               # K padded to a tile multiple
    Bp = ((B + BATCH_TILE - 1) // BATCH_TILE) * BATCH_TILE

    x = image.reshape(B, D)
    # Single pad (no zero-buffer + copy), cast to bf16 for the streamed matmul.
    x_pad = jnp.pad(x, ((0, Bp - B), (0, Dp - D))).astype(jnp.bfloat16)

    result_pad = emotion_head(x_pad, w1, b1, w2, b2)
    result = result_pad[:B, :NUM_OUT]

    scores = result[:, :NUM_CLASSES]
    label_ids = jnp.argmax(scores, axis=-1)
    return scores, result[:, VALENCE_IDX], result[:, AROUSAL_IDX], label_ids


def emotion_detector_forward(image, params):
    """Mirrors EmotionDetector.forward: result = model(image); slice + argmax."""
    w1, b1, w2, b2 = params
    scores, valence, arousal, label_ids = _device_forward(image, w1, b1, w2, b2)
    # Note: device_get forces a host sync (needed to build the Python label
    # list, exactly like the PyTorch forward's .item() calls).
    return {
        "labels": [CLASSES[str(int(i))] for i in jax.device_get(label_ids)],
        "valence": valence,
        "arousal": arousal,
        "scores": scores,
    }


if __name__ == "__main__":
    key = jax.random.PRNGKey(0)
    k_img, k_par = jax.random.split(key)

    # Small NCHW image batch, like the PyTorch module's forward(image).
    B, C, Himg, Wimg = 2, 3, 16, 16
    image = jax.random.normal(k_img, (B, C, Himg, Wimg), jnp.float32)

    params = init_params(k_par, C * Himg * Wimg)
    out = emotion_detector_forward(image, params)

    jax.block_until_ready(out["scores"])
    jax.block_until_ready(out["valence"])
    jax.block_until_ready(out["arousal"])
    assert out["scores"].shape == (B, NUM_CLASSES)
    assert out["valence"].shape == (B,)
    assert out["arousal"].shape == (B,)
    assert len(out["labels"]) == B
    print("KERNEL_OK")
</pallas_src>

<mosaic_0001>
module attributes {stable_mosaic.version = 11 : i64} {
  func.func @_emotion_mlp_kernel(%arg0: i32, %arg1: memref<16x256xbf16, #tpu.memory_space<vmem>>, %arg2: memref<256x128xbf16, #tpu.memory_space<vmem>>, %arg3: memref<1x128xf32, #tpu.memory_space<vmem>>, %arg4: memref<128x128xbf16, #tpu.memory_space<vmem>>, %arg5: memref<1x128xf32, #tpu.memory_space<vmem>>, %arg6: memref<16x128xf32, #tpu.memory_space<vmem>>, %arg7: memref<16x128xf32, #tpu.memory_space<vmem>>) attributes {dimension_semantics = [#tpu.dimension_semantics<arbitrary>], iteration_bounds = array<i64: 3>, scalar_prefetch = 0 : i64, scratch_operands = 1 : i64, tpu.core_type = #tpu.core_type<tc>, window_params = [{transform_indices = @transform_0, window_bounds = array<i64: 16, 256>}, {transform_indices = @transform_1, window_bounds = array<i64: 256, 128>}, {pipeline_mode = #tpu.pipeline_mode<synchronous>, transform_indices = @transform_2, window_bounds = array<i64: 1, 128>}, {pipeline_mode = #tpu.pipeline_mode<synchronous>, transform_indices = @transform_3, window_bounds = array<i64: 128, 128>}, {pipeline_mode = #tpu.pipeline_mode<synchronous>, transform_indices = @transform_4, window_bounds = array<i64: 1, 128>}, {pipeline_mode = #tpu.pipeline_mode<synchronous>, transform_indices = @transform_5, window_bounds = array<i64: 16, 128>}]} {
    %c0_i32 = arith.constant 0 : i32
    %0 = arith.cmpi eq, %arg0, %c0_i32 : i32
    %1 = arith.extui %0 : i1 to i32
    %c0_i32_0 = arith.constant 0 : i32
    %2 = arith.cmpi ne, %1, %c0_i32_0 : i32
    scf.if %2 {
      %cst_9 = arith.constant 0.000000e+00 : f32
      %12 = vector.broadcast %cst_9 : f32 to vector<16x128xf32>
      %c0_10 = arith.constant 0 : index
      %c0_11 = arith.constant 0 : index
      %13 = vector.load %arg7[%c0_10, %c0_11] : memref<16x128xf32, #tpu.memory_space<vmem>>, vector<16x128xf32>
      tpu.vector_store %arg7[%c0_10, %c0_11], %12 {strides = array<i32>} : memref<16x128xf32, #tpu.memory_space<vmem>>, vector<16x128xf32>,
    } else {
    }
    %c0 = arith.constant 0 : index
    %c0_1 = arith.constant 0 : index
    %3 = vector.load %arg7[%c0, %c0_1] : memref<16x128xf32, #tpu.memory_space<vmem>>, vector<16x128xf32>
    %c0_2 = arith.constant 0 : index
    %c0_3 = arith.constant 0 : index
    %4 = vector.load %arg1[%c0_2, %c0_3] : memref<16x256xbf16, #tpu.memory_space<vmem>>, vector<16x256xbf16>
    %c0_4 = arith.constant 0 : index
    %c0_5 = arith.constant 0 : index
    %5 = vector.load %arg2[%c0_4, %c0_5] : memref<256x128xbf16, #tpu.memory_space<vmem>>, vector<256x128xbf16>
    %cst = arith.constant dense<0.000000e+00> : vector<16x128xf32>
    %6 = tpu.matmul %4, %5, %cst {dimension_numbers = #tpu.dot_dimension_numbers<[1], [0], [0], [1], [0, 0, 1, 1], [], []>} : vector<16x256xbf16>, vector<256x128xbf16>, vector<16x128xf32> -> vector<16x128xf32>
    %7 = arith.addf %3, %6 : vector<16x128xf32>
    %c0_6 = arith.constant 0 : index
    %c0_7 = arith.constant 0 : index
    %8 = vector.load %arg7[%c0_6, %c0_7] : memref<16x128xf32, #tpu.memory_space<vmem>>, vector<16x128xf32>
    tpu.vector_store %arg7[%c0_6, %c0_7], %7 {strides = array<i32>} : memref<16x128xf32, #tpu.memory_space<vmem>>, vector<16x128xf32>,
    %c2_i32 = arith.constant 2 : i32
    %9 = arith.cmpi eq, %arg0, %c2_i32 : i32
    %10 = arith.extui %9 : i1 to i32
    %c0_i32_8 = arith.constant 0 : i32
    %11 = arith.cmpi ne, %10, %c0_i32_8 : i32
    scf.if %11 {
      %c0_9 = arith.constant 0 : index
      %c0_10 = arith.constant 0 : index
      %12 = vector.load %arg7[%c0_9, %c0_10] : memref<16x128xf32, #tpu.memory_space<vmem>>, vector<16x128xf32>
      %c0_11 = arith.constant 0 : index
      %c0_12 = arith.constant 0 : index
      %13 = vector.load %arg3[%c0_11, %c0_12] : memref<1x128xf32, #tpu.memory_space<vmem>>, vector<1x128xf32>
      %14 = vector.broadcast %13 : vector<1x128xf32> to vector<16x128xf32>
      %15 = arith.addf %12, %14 : vector<16x128xf32>
      %cst_13 = arith.constant 0.000000e+00 : f32
      %16 = vector.broadcast %cst_13 : f32 to vector<16x128xf32>
      %17 = arith.maximumf %15, %16 : vector<16x128xf32>
      %18 = arith.truncf %17 : vector<16x128xf32> to vector<16x128xbf16>
      %c0_14 = arith.constant 0 : index
      %c0_15 = arith.constant 0 : index
      %19 = vector.load %arg4[%c0_14, %c0_15] : memref<128x128xbf16, #tpu.memory_space<vmem>>, vector<128x128xbf16>
      %cst_16 = arith.constant dense<0.000000e+00> : vector<16x128xf32>
      %20 = tpu.matmul %18, %19, %cst_16 {dimension_numbers = #tpu.dot_dimension_numbers<[1], [0], [0], [1], [0, 0, 1, 1], [], []>} : vector<16x128xbf16>, vector<128x128xbf16>, vector<16x128xf32> -> vector<16x128xf32>
      %c0_17 = arith.constant 0 : index
      %c0_18 = arith.constant 0 : index
      %21 = vector.load %arg5[%c0_17, %c0_18] : memref<1x128xf32, #tpu.memory_space<vmem>>, vector<1x128xf32>
      %22 = vector.broadcast %21 : vector<1x128xf32> to vector<16x128xf32>
      %23 = arith.addf %20, %22 : vector<16x128xf32>
      %c0_19 = arith.constant 0 : index
      %c0_20 = arith.constant 0 : index
      %24 = vector.load %arg6[%c0_19, %c0_20] : memref<16x128xf32, #tpu.memory_space<vmem>>, vector<16x128xf32>
      tpu.vector_store %arg6[%c0_19, %c0_20], %23 {strides = array<i32>} : memref<16x128xf32, #tpu.memory_space<vmem>>, vector<16x128xf32>,
    } else {
    }
    return
  }
  func.func @transform_0(%arg0: i32) -> (i32, i32) {
    %c0_i32 = arith.constant 0 : i32
    %c0_i32_0 = arith.constant 0 : i32
    return %c0_i32, %arg0 : i32, i32
  }
  func.func @transform_1(%arg0: i32) -> (i32, i32) {
    %c0_i32 = arith.constant 0 : i32
    %c0_i32_0 = arith.constant 0 : i32
    return %arg0, %c0_i32 : i32, i32
  }
  func.func @transform_2(%arg0: i32) -> (i32, i32) {
    %c0_i32 = arith.constant 0 : i32
    %c0_i32_0 = arith.constant 0 : i32
    %c0_i32_1 = arith.constant 0 : i32
    return %c0_i32, %c0_i32_0 : i32, i32
  }
  func.func @transform_3(%arg0: i32) -> (i32, i32) {
    %c0_i32 = arith.constant 0 : i32
    %c0_i32_0 = arith.constant 0 : i32
    %c0_i32_1 = arith.constant 0 : i32
    return %c0_i32, %c0_i32_0 : i32, i32
  }
  func.func @transform_4(%arg0: i32) -> (i32, i32) {
    %c0_i32 = arith.constant 0 : i32
    %c0_i32_0 = arith.constant 0 : i32
    %c0_i32_1 = arith.constant 0 : i32
    return %c0_i32, %c0_i32_0 : i32, i32
  }
  func.func @transform_5(%arg0: i32) -> (i32, i32) {
    %c0_i32 = arith.constant 0 : i32
    %c0_i32_0 = arith.constant 0 : i32
    %c0_i32_1 = arith.constant 0 : i32
    return %c0_i32, %c0_i32_0 : i32, i32
  }
}

</mosaic_0001>

<bundles_post_ra>
// kernel: _device_forward.1
= control target key start
LH: loop header
LB: loop body
LE: loop exit
PB: predicated region body
PF: predicated region fallthrough
CT: control target
= control target key end

     0   :  { %10 = vsyncpa [#allocation5], 0  ;;  %s1101_s0 = inlined_call_operand.vmem [shape: bf16[16,768], index: 0, kind: input, shape index: {}]   ;;  %s1102_s1 = inlined_call_operand.hbm [shape: bf16[768,128], index: 1, kind: input, shape index: {}]   ;;  %s1103_s2 = inlined_call_operand.vmem [shape: f32[1,128], index: 2, kind: input, shape index: {}]   ;;  %s1104_s3 = inlined_call_operand.vmem [shape: bf16[128,128], index: 3, kind: input, shape index: {}]   ;;  %s1105_s4 = inlined_call_operand.vmem [shape: f32[1,128], index: 4, kind: input, shape index: {}]   ;;  %s1106_s5 = inlined_call_operand.vmem [shape: f32[16,128], index: 5, kind: output, shape index: {}]  }
   0x1   :  { %12 = vsyncpa [#allocation5 + $0x1], 0  ;;  %s937_s18 = smov 0   ;;  %s939_s19 = smov 0  }
   0x2   :  { %s941_s20 = smov 0   ;;  %s943_s21 = smov 0  }
   0x3 LB: > { %s956_s22 = sadd.s32 4294967295, %s899_s21   ;;  %s959_s23 = sadd.s32 1, %s899_s21   ;;  %s899_s21 = sphi %s943_s21, %s1112_s21   ;;  %s895_s20 = sphi %s941_s20, %s1111_s20   ;;  %s891_s19 = sphi %s939_s19, %s1110_s19   ;;  %s887_s18 = sphi %s937_s18, %s1109_s18  }
   0x4   : > { %s22_s24 = ssub.s32 %s899_s21, %s959_s23  ;;  %s25_s25 = sadd.s32 1, %s895_s20 }
   0x5   : > { %p23_p0 = scmp.eq.s32.totalorder %s22_s24, 0  ;;  %p32_p1 = scmp.ne.s32.totalorder %s895_s20, %s891_s19 }
   0x6   : > { %p33_p2 = scmp.eq.s32.totalorder %s899_s21, 0  ;;  %p64_p3 = scmp.ne.s32.totalorder %s891_s19, %s887_s18 }
   0x7   : > { %s969_s26 = scalar_select %p23_p0, %s895_s20, %s25_s25  }
   0x8   : > { %p971_p4 = por %p33_p2, %p32_p1  ;;  %p65_p5 = scmp.eq.s32.totalorder %s956_s22, 0 }
   0x9   : > { %p676_p7 = scmp.ge.s32.totalorder %s899_s21, 3 }
   0xa   : > { %p976_p6 = por %p65_p5, %p64_p3 }
   0xb   : > { %177 = sbr.rel (%p676_p7) target bundleno = 51 (0x33), region = 28 }
  0x12   : > { %180 = sbr.rel (!%p971_p4) target bundleno = 25 (0x19), region = 32  ;;  %s182_s29 = sand.u32 (%p971_p4), 1, %s895_s20  }
  0x13   : > { %s718_s30 = sshll.u32 (%p971_p4), %s899_s21, 3  ;;  %s677_s6 = sshll.u32 (%p971_p4), %s182_s29, 4 }
  0x14   : > { %s187_s9 = scalar_lea.vmem (%p971_p4), %s1101_s0, %s718_s30  ;;  %s184_s10 = scalar_lea.vmem (%p971_p4), [#allocation3], %s677_s6 }
  0x15   : > { %v217_v0 = vld [vmem:[%s187_s9] sm:$0xff] (%p971_p4)  ;;  %v219_v1 = vld [vmem:[%s187_s9 + $0x18] sm:$0xff] (%p971_p4) }
  0x16   : > { %218 = vst [vmem:[%s184_s10] sm:$0xff] (%p971_p4), %v217_v0  ;;  %220 = vst [vmem:[%s184_s10 + $0x8] sm:$0xff] (%p971_p4), %v219_v1 }
  0x19 PF: > { %s227_s11 = sand.u32 1, %s895_s20   ;;  %s719_s12 = sshll.u32 %s899_s21, 11 }
  0x1a   : > { %s680_s13 = sshll.u32 %s227_s11, 7  ;;  %s993_s16 = scalar_lea.hbm %s1102_s1, %s719_s12 }
  0x1b   : > { %s231_s17 = scalar_lea.vmem [#allocation4], %s680_s13  ;;  %s997_s24 = scalar_lea.sflag [#allocation5], %s227_s11 }
  0x1c   : > { %s238_s18 = sshll.u32 %s231_s17, 4  ;;  %s837_s25 = scalar_lea.hbm %s993_s16, 2048  ;;  %s995_s18 = int_to_ptr.vmem [resolvable:$true] %s238_s18 }
  0x1d   : > { %p838_p8 = scmp.ne.s32.totalorder %s993_s16, %s837_s25  ;;  %s841_s6 = scalar_lea.hbm %s1102_s1, 6144 }
  0x1e   : > { %p842_p11 = scmp.lt.u32.totalorder %s993_s16, %s1102_s1  ;;  %p843_p12 = scmp.lt.u32.totalorder %s841_s6, %s837_s25 }
  0x1f   : > { %p839_p9 = pnand %p838_p8, %p971_p4  ;;  %p845_p0 = scmp.lt.u32.totalorder %s837_s25, %s993_s16 }
  0x20   : > { %p844_p13 = por %p843_p12, %p842_p11 }
  0x21   : > { %p840_p10 = pneg %p839_p9 }
  0x22   : > { %p846_p1 = por %p845_p0, %p844_p13 }
  0x24   : > { %p847_p2 = pnand %p846_p1, %p840_p10 }
  0x26   : > { %850 = shalt.err (!%p847_p2)
}
  0x27   : > { %s851_s9 = scalar_lea.vmem %s995_s18, 2048  ;;  %s901_s10 = smov [#allocation4]  }
  0x28   : > { %p852_p3 = scmp.ne.s32.totalorder %s995_s18, %s851_s9  ;;  %s855_s11 = sshll.u32 %s901_s10, 4  ;;  %s856_s11 = int_to_ptr.vmem [resolvable:$false] %s855_s11 }
  0x29   : > { %s857_s12 = scalar_lea.vmem %s856_s11, 4096  ;;  %p858_p8 = scmp.lt.s32.totalorder %s995_s18, %s856_s11 }
  0x2a   : > { %p853_p5 = pnand %p852_p3, %p971_p4  ;;  %p859_p9 = scmp.lt.s32.totalorder %s857_s12, %s851_s9 }
  0x2c   : > { %p854_p7 = pneg %p853_p5  ;;  %p860_p11 = por %p859_p9, %p858_p8 }
  0x2e   : > { %p861_p12 = pnand %p860_p11, %p854_p7 }
  0x30   : > { %864 = shalt.err (!%p861_p12)
}
  0x31   : > { %s902_s13 = smov 64   ;;  %s903_s14 = smov 4  }
  0x32   : > { %771 = dma.hbm_to_vmem [thread:$0]  (%p971_p4), %s993_s16, 2048, %s995_s18, %s997_s24, %s902_s13, %s902_s13, %s903_s14  }
  0x33 PF: > { %p683_p10 = scmp.ge.s32.totalorder %s899_s21, 1  ;;  %p246_p13 = scmp.lt.s32.totalorder %s899_s21, 4 }
  0x35   : > { %p247_p0 = pnand %p683_p10, %p246_p13 }
  0x36   : > { %s253_s15 = sand.u32 (!%p247_p0), 1, %s891_s19  }
  0x37   : > { %250 = sbr.rel (%p247_p0) target bundleno = 555 (0x22b), region = 74  ;;  %s684_s17 = sshll.u32 (!%p247_p0), %s253_s15, 4 }
  0x38   : > { %s685_s25 = sshll.u32 (!%p247_p0), %s253_s15, 7  ;;  %s1024_s29 = scalar_lea.vmem (!%p247_p0), [#allocation3], %s684_s17 }
  0x39   : > { %s260_s30 = scalar_lea.sflag (!%p247_p0), [#allocation5], %s253_s15  ;;  %s1026_s6 = scalar_lea.vmem (!%p247_p0), [#allocation4], %s685_s25 }
  0x3e   : > { %882 = dma.done.wait (%p976_p6), %s260_s30, 2048  }
  0x3f   : > { %884 = vsyncadd (%p976_p6), %s260_s30, 4294965248  ;;  %p686_p4 = scmp.ne.s32.totalorder %s956_s22, 0 }
  0x40   : > { %v904_v2 = vmov (!%p686_p4), 0.0  }
  0x41   : > { %295 = sbr.rel (%p686_p4) target bundleno = 72 (0x48), region = 86  ;;  %296 = vst [vmem:[#allocation2] sm:$0xff] (!%p686_p4), %v904_v2  ;;  %297 = vst [vmem:[#allocation2 + $0x8] sm:$0xff] (!%p686_p4), %v904_v2 }
  0x48 PF: > { %v810_v3 = vld [vmem:[%s1026_s6 + $0x40] sm:$0xff]   ;;  %v812_v5 = vld [vmem:[%s1026_s6 + $0x48] sm:$0xff]   ;;  %v814_v7 = vld [vmem:[%s1026_s6 + $0x50] sm:$0xff]   ;;  %p705_p6 = scmp.ne.s32.totalorder %s956_s22, 2 }
  0x49   : > { %v811_v4 = vld [vmem:[%s1026_s6] sm:$0xff]   ;;  %720 = vmatprep.subr.bf16.mxu0 %v810_v3  ;;  %v813_v6 = vld [vmem:[%s1026_s6 + $0x8] sm:$0xff]   ;;  %v815_v8 = vld [vmem:[%s1026_s6 + $0x10] sm:$0xff]   ;;  %v905_v32 = vmov (!%p705_p6), 0.0   ;;  %vm906_vm0 = vmmov (!%p705_p6), 0  }
  0x4a   : > { %721 = vmatpush3.bf16.msra.mxu0 %v811_v4  ;;  %v816_v9 = vld [vmem:[%s1026_s6 + $0x58] sm:$0xff]   ;;  %v818_v11 = vld [vmem:[%s1026_s6 + $0x60] sm:$0xff]   ;;  %v820_v13 = vld [vmem:[%s1026_s6 + $0x68] sm:$0xff]  }
  0x4b   : > { %722 = vmatprep.subr.bf16.mxu0 %v812_v5  ;;  %v817_v10 = vld [vmem:[%s1026_s6 + $0x18] sm:$0xff]   ;;  %v819_v12 = vld [vmem:[%s1026_s6 + $0x20] sm:$0xff]   ;;  %v821_v15 = vld [vmem:[%s1026_s6 + $0x28] sm:$0xff]  }
  0x4c   : > { %v828_v14 = vld [vmem:[%s1024_s29 + $0x4] ss:$8 sps:$4 sm:$0xff]   ;;  %v826_v20 = vld [vmem:[%s1024_s29] ss:$8 sps:$4 sm:$0xff]  }
  0x4d   : > { %472 = vmatprep.mubr.bf16.mxu0 %v828_v14  ;;  %v822_v16 = vld [vmem:[%s1026_s6 + $0x70] sm:$0xff]   ;;  %v824_v18 = vld [vmem:[%s1026_s6 + $0x78] sm:$0xff]   ;;  %v831_v34 = vld [vmem:[%s1104_s3 + $0x10] sm:$0xff] (!%p705_p6)  }
  0x4e   : > { %723 = vmatpush3.bf16.msra.mxu0 %v813_v6  ;;  %v823_v17 = vld [vmem:[%s1026_s6 + $0x30] sm:$0xff]   ;;  %v825_v19 = vld [vmem:[%s1026_s6 + $0x38] sm:$0xff]   ;;  %v832_v35 = vld [vmem:[%s1104_s3 + $0x18] sm:$0xff] (!%p705_p6)  }
  0x4f   : > { %724 = vmatprep.subr.bf16.mxu0 %v814_v7  ;;  %v298_v22 = vld [vmem:[#allocation2] sm:$0xff]  ;;  %v299_v26 = vld [vmem:[#allocation2 + $0x8] sm:$0xff]  ;;  %v835_v43 = vld [vmem:[%s1104_s3 + $0x30] sm:$0xff] (!%p705_p6)  }
  0x50   : > { %v829_v31 = vld [vmem:[%s1104_s3] sm:$0xff] (!%p705_p6)   ;;  %v830_v33 = vld [vmem:[%s1104_s3 + $0x8] sm:$0xff] (!%p705_p6)   ;;  %v836_v46 = vld [vmem:[%s1104_s3 + $0x38] sm:$0xff] (!%p705_p6)  }
  0x51   : > { %v833_v36 = vld [vmem:[%s1104_s3 + $0x20] sm:$0xff] (!%p705_p6)   ;;  %v834_v37 = vld [vmem:[%s1104_s3 + $0x28] sm:$0xff] (!%p705_p6)  }
  0x52   : > { %725 = vmatpush3.bf16.msra.mxu0 %v815_v8  ;;  %v706_v40 = vld [vmem:[%s1103_s2] ss:$0 sm:$0xff] (!%p705_p6) }
  0x53   : > { %726 = vmatprep.subr.bf16.mxu0 %v816_v9  ;;  %v707_v48 = vld [vmem:[%s1105_s4] ss:$0 sm:$0xff] (!%p705_p6) }
  0x56   : > { %727 = vmatpush3.bf16.msra.mxu0 %v817_v10 }
  0x57   : > { %728 = vmatprep.subr.bf16.mxu0 %v818_v11 }
  0x5a   : > { %729 = vmatpush3.bf16.msra.mxu0 %v819_v12 }
  0x5b   : > { %730 = vmatprep.subr.bf16.mxu0 %v820_v13 }
  0x5e   : > { %731 = vmatpush3.bf16.msra.mxu0 %v821_v15 }
  0x5f   : > { %732 = vmatprep.subr.bf16.mxu0 %v822_v16 }
  0x62   : > { %733 = vmatpush3.bf16.msra.mxu0 %v823_v17 }
  0x63   : > { %734 = vmatprep.subr.bf16.mxu0 %v824_v18 }
  0x66   : > { %735 = vmatpush3.bf16.msra.mxu0 %v825_v19 }
  0x67   : > { %751 = vmatprep.subr.bf16.mxu0 (!%p705_p6), %v905_v32 }
  0x69   : > { %473 = vmatmul.mubr.bf16.vlgmr.msra.gmra.mrb[0].mxu0 %v826_v20 }
  0x6a   : > { %752 = vmatpush3.bf16.msra.mxu0 (!%p705_p6), %v829_v31  ;;  %767 = vmatprep.mubr.msk.bf16.mxu0 (!%p705_p6), %vm906_vm0, %v905_v32 }
  0x6b   : > { %753 = vmatprep.subr.bf16.mxu0 (!%p705_p6), %v905_v32 }
  0x6e   : > { %754 = vmatpush3.bf16.msra.mxu0 (!%p705_p6), %v830_v33 }
  0x6f   : > { %755 = vmatprep.subr.bf16.mxu0 (!%p705_p6), %v905_v32 }
  0x72   : > { %756 = vmatpush3.bf16.msra.mxu0 (!%p705_p6), %v831_v34 }
  0x73   : > { %757 = vmatprep.subr.bf16.mxu0 (!%p705_p6), %v905_v32 }
  0x76   : > { %758 = vmatpush3.bf16.msra.mxu0 (!%p705_p6), %v832_v35 }
  0x77   : > { %759 = vmatprep.subr.bf16.mxu0 (!%p705_p6), %v905_v32 }
  0x7a   : > { %760 = vmatpush3.bf16.msra.mxu0 (!%p705_p6), %v833_v36 }
  0x7b   : > { %761 = vmatprep.subr.bf16.mxu0 (!%p705_p6), %v905_v32 }
  0x7e   : > { %762 = vmatpush3.bf16.msra.mxu0 (!%p705_p6), %v834_v37 }
  0x7f   : > { %763 = vmatprep.subr.bf16.mxu0 (!%p705_p6), %v905_v32 }
  0x82   : > { %764 = vmatpush3.bf16.msra.mxu0 (!%p705_p6), %v835_v43 }
  0x83   : > { %765 = vmatprep.subr.bf16.mxu0 (!%p705_p6), %v905_v32 }
  0x86   : > { %766 = vmatpush3.bf16.msra.mxu0 (!%p705_p6), %v836_v46 }
 0x13c   : > { %v736_v21 = vpop.f32.mrb[0].mxu0 }
 0x13d   : > { %v737_v23 = vpop.f32.mrb[1].mxu0 }
 0x13e   : > { %v738_v24 = vadd.f32 %v737_v23, %v736_v21  ;;  %v739_v25 = vpop.f32.mrb[2].mxu0  ;;  %488 = sbr.rel (%p705_p6) target bundleno = 555 (0x22b), region = 90 }
 0x13f   : > { %v740_v27 = vpop.f32.mrb[3].mxu0 }
 0x140   : > { %v481_v28 = vadd.f32 %v738_v24, %v298_v22  ;;  %v741_v29 = vadd.f32 %v740_v27, %v739_v25 }
 0x142   : > { %483 = vst [vmem:[#allocation2] sm:$0xff] %v481_v28  ;;  %v482_v30 = vadd.f32 %v741_v29, %v299_v26 }
 0x144   : > { %484 = vst [vmem:[#allocation2 + $0x8] sm:$0xff] %v482_v30 }
 0x149   : > { %v489_v38 = vld [vmem:[#allocation2] sm:$0xff] }
 0x14a   : > { %v498_v41 = vadd.f32 %v706_v40, %v489_v38 }
 0x14b   : > { %v490_v39 = vld [vmem:[#allocation2 + $0x8] sm:$0xff] }
 0x14c   : > { %v499_v42 = vadd.f32 %v706_v40, %v490_v39  ;;  %v500_v44 = vmax.f32 %v498_v41, 0.0 }
 0x14e   : > { %v501_v45 = vmax.f32 %v499_v42, 0.0 }
 0x150   : > { %v502_v47 = vpack.c.bf16 %v501_v45, %v500_v44 }
 0x152   : > { %768 = vmatmul.mubr.bf16.vlgmr.msra.gmra.mrb[0].mxu0 %v502_v47 }
 0x225   : > { %v608_v49 = vpop.f32.mrb[0].mxu0 }
 0x226   : > { %v609_v50 = vadd.f32 %v707_v48, %v608_v49  ;;  %v769_v51 = vpop.f32.mrb[1].mxu0 }
 0x227   : > { %v611_v52 = vpop.f32.mrb[2].mxu0 }
 0x228   : > { %615 = vst [vmem:[%s1106_s5] sm:$0xff] %v609_v50  ;;  %v612_v53 = vadd.f32 %v707_v48, %v611_v52  ;;  %v770_v54 = vpop.f32.mrb[3].mxu0 }
 0x22a   : > { %616 = vst [vmem:[%s1106_s5 + $0x8] sm:$0xff] %v612_v53 }
 0x22b PF: > { %p15_p1 = scmp.ge.s32.totalorder %s959_s23, 5   ;;  %s1109_s18 = smov %s891_s19 }
 0x22c   : > { %s1110_s19 = smov %s895_s20  ;;  %s1111_s20 = smov %s969_s26 }
 0x22d   : > { %s1112_s21 = smov %s959_s23  ;;  %17 = sbr.rel (!%p15_p1) target bundleno = 3 (0x3), region = 130 }
 0x234   :  { %628 = vsyncpa [#allocation5], 1 }
 0x235   :  { %630 = vsyncpa [#allocation5 + $0x1], 1 }

</bundles_post_ra>
